<compile_context>
chip_gen: v5e
topology: v5e:2x2
jax: 0.10.0
libtpu: 0.0.40
codegen_flags: <defaults>
</compile_context>

<pallas_src>
import functools

import jax
import jax.numpy as jnp
from jax import lax
from jax.experimental import pallas as pl
from jax.experimental.pallas import tpu as pltpu

MASK_LOGIT = -1000000.0  # matches `logits[..., mask_id] = -1000000.0`


def mdlm_fused_kernel(table_ref, tbias_ref, rand_ref, scal_ref, z_ref, *, mask_id, min_p):
    """One grid point = one (token-tile, denoising-step) pair.

    table_ref : (V, V)     bf16  emb @ W, resident in VMEM for the whole grid
    tbias_ref : (1, V)     f32   time-bias row, resident
    rand_ref  : (1, T, V)  f32   per-step uniforms for this token tile (pipelined)
    scal_ref  : (S, 4)     f32   SMEM: [t, move_chance_t, move_chance_tm1, pad] per step
    z_ref     : (T, 1)     i32   token state; resident across the step axis (output)
    """
    s = pl.program_id(1)              # step index; original loop index i = num_steps - 1 - s
    num_steps = pl.num_programs(1)

    tile_n = z_ref.shape[0]
    vocab = table_ref.shape[1]

    # Prior sample: all-mask tokens at the first denoising step of this tile.
    @pl.when(s == 0)
    def _init():
        z_ref[...] = jnp.full(z_ref.shape, mask_id, dtype=jnp.int32)

    tok = z_ref[...]                                               # (T, 1) int32
    lane = lax.broadcasted_iota(jnp.int32, (tile_n, vocab), 1)     # vocab id per lane
    is_mask_lane = lane == mask_id

    # Synthetic model: logits = one_hot(z_t) @ (emb @ W) + t * time_bias   (single MXU matmul)
    one_hot = (lane == tok).astype(jnp.bfloat16)                   # exact in bf16
    t_s = scal_ref[s, 0]
    logits = (jnp.dot(one_hot, table_ref[...], preferred_element_type=jnp.float32)
              + t_s * tbias_ref[...])                              # (T, V) f32, row-broadcast bias
    logits = jnp.where(is_mask_lane, MASK_LOGIT, logits)           # suppress mask token

    copy_flag = tok != mask_id                                     # carry already-unmasked tokens

    # ---- i == 0 (last grid step): greedy argmax ---------------------------------------------
    @pl.when(s == num_steps - 1)
    def _greedy():
        lmax = jnp.max(logits, axis=-1, keepdims=True)
        z_tm1 = jnp.min(jnp.where(logits == lmax, lane, vocab), axis=-1, keepdims=True)
        z_ref[...] = jnp.where(copy_flag, tok, z_tm1).astype(jnp.int32)

    # ---- i > 0: MDLM reverse step (Gumbel-trick categorical sample) --------------------------
    @pl.when(s < num_steps - 1)
    def _sample():
        mct = scal_ref[s, 1]      # move_chance_t
        mctm1 = scal_ref[s, 2]    # move_chance_tm1
        lmax = jnp.max(logits, axis=-1, keepdims=True)
        e = jnp.exp(logits - lmax)                                 # (T, V)
        sum_e = jnp.sum(e, axis=-1, keepdims=True)                 # (T, 1)
        if min_p > 0.0:
            # Faithful path: true probabilities are needed for the min_p threshold.
            probs = (e / sum_e) * (mct - mctm1)
            probs = jnp.where(is_mask_lane, mctm1, probs)
            probs = probs / mct
            is_small = (probs < min_p).astype(jnp.float32)
            probs = (1.0 - is_small) * probs
            w = probs / jnp.sum(probs, axis=-1, keepdims=True)
        else:
            # Argmax-invariant rescaling of probs by the positive row scalar (sum_e * mct):
            # removes two full (T, V) divides; sampling distribution is unchanged.
            w = jnp.where(is_mask_lane, mctm1 * sum_e, e * (mct - mctm1))
        u = rand_ref[0]                                            # (T, V) uniform [0, 1)
        gumbel_norm = 1e-10 - jnp.log(u + 1e-10)                   # > 0
        ratio = w / gumbel_norm
        rmax = jnp.max(ratio, axis=-1, keepdims=True)
        z_tm1 = jnp.min(jnp.where(ratio == rmax, lane, vocab), axis=-1, keepdims=True)
        z_ref[...] = jnp.where(copy_flag, tok, z_tm1).astype(jnp.int32)


def _step_scalar_table(num_denoising_steps, t_eps):
    """Per grid-step [t, move_chance_t, move_chance_tm1, 0]; grid step s maps to i = S-1-s."""
    S = num_denoising_steps
    ts = jnp.linspace(t_eps, 1.0 - t_eps, S + 1).astype(jnp.float32)
    i_idx = jnp.arange(S - 1, -1, -1)
    t = ts[i_idx]
    tm1 = ts[jnp.maximum(i_idx - 1, 0)]

    def move_chance(x):   # 1 - exp(-sigma),  sigma = -log1p(-(1-eps) * clip(x, eps, 1))
        sigma = -jnp.log1p(-(1.0 - t_eps) * jnp.clip(x, t_eps, 1.0))
        return 1.0 - jnp.exp(-sigma)

    return jnp.stack([t, move_chance(t), move_chance(tm1), jnp.zeros_like(t)],
                     axis=1).astype(jnp.float32)


def _pick_tile_n(n_tokens, vocab, budget_bytes=4 << 20):
    """Largest token-tile whose ~10 live (tile, V) temporaries fit the VMEM budget."""
    bytes_per_row = vocab * 4 * 10
    max_rows = max(8, budget_bytes // bytes_per_row)
    if n_tokens <= max_rows:
        return n_tokens
    t = (max_rows // 8) * 8
    while t >= 8:
        if n_tokens % t == 0:
            return t
        t -= 8
    return n_tokens


def mdlm_generate(emb, w, tbias, *, num_samples, max_length, num_denoising_steps,
                  mask_id, t_eps=1e-4, min_p=0.0, seed=1234, uniforms=None, tile_n=None):
    """MDLMSampler._do_generate: all-mask prior + fused reverse loop. Returns token ids (B, L)."""
    V, H = emb.shape
    assert w.shape == (H, V) and tbias.shape == (1, V)
    N = num_samples * max_length
    S = num_denoising_steps

    # Step-invariant precompute: fold emb @ W into one (V, V) bf16 MXU operand.
    table = jnp.dot(emb, w, preferred_element_type=jnp.float32).astype(jnp.bfloat16)
    step_scalars = _step_scalar_table(S, t_eps)                         # (S, 4) f32 -> SMEM

    if uniforms is None:
        uniforms = jax.random.uniform(jax.random.PRNGKey(seed), (S, N, V), jnp.float32)
    assert uniforms.shape == (S, N, V)

    # V is kept un-tiled (full lane axis); very large vocabularies would need a flash-style
    # online max/argmax over V tiles.
    tile_n = tile_n or _pick_tile_n(N, V)
    assert N % tile_n == 0
    n_tiles = N // tile_n

    # VMEM budget: resident table/bias + double-buffered noise/out tiles + temporaries.
    est = (2 * (V * V * 2 + V * 4 + tile_n * V * 4 + tile_n * 4)
           + 10 * tile_n * V * 4 + (1 << 20))
    vmem_limit = int(min(48 << 20, max(est, 16 << 20)))   # >= v5e 16 MiB default, <= v7x 64 MiB

    kernel = functools.partial(mdlm_fused_kernel, mask_id=mask_id, min_p=min_p)
    out = pl.pallas_call(
        kernel,
        out_shape=jax.ShapeDtypeStruct((N, 1), jnp.int32),
        grid=(n_tiles, S),
        in_specs=[
            pl.BlockSpec((V, V), lambda n, s: (0, 0)),              # emb@W table, resident
            pl.BlockSpec((1, V), lambda n, s: (0, 0)),              # time-bias row, resident
            pl.BlockSpec((1, tile_n, V), lambda n, s: (s, n, 0)),   # per-step uniforms, pipelined
            pl.BlockSpec(memory_space=pltpu.MemorySpace.SMEM),      # per-step scalars
        ],
        out_specs=pl.BlockSpec((tile_n, 1), lambda n, s: (n, 0)),   # token state, resident over s
        compiler_params=pltpu.CompilerParams(
            dimension_semantics=("parallel", "arbitrary"),
            vmem_limit_bytes=vmem_limit),
    )(table, tbias.astype(jnp.float32), uniforms, step_scalars)
    return out.reshape(num_samples, max_length)
    # TODO(synk): tokenizer.batch_decode (text decoding) has no Pallas equivalent; token ids only.


def mdlm_generate_reference(emb, w, tbias, uniforms, *, num_samples, max_length,
                            num_denoising_steps, mask_id, t_eps=1e-4, min_p=0.0):
    """Pure-JAX port of the ORIGINAL (unsimplified) MDLM math, for validation."""
    V, _ = emb.shape
    N = num_samples * max_length
    S = num_denoising_steps
    table = jnp.dot(emb, w).astype(jnp.bfloat16).astype(jnp.float32)  # same bf16 weights as kernel
    scal = _step_scalar_table(S, t_eps)
    z = jnp.full((N,), mask_id, dtype=jnp.int32)
    for s in range(S):
        t, mct, mctm1 = scal[s, 0], scal[s, 1], scal[s, 2]
        logits = table[z] + t * tbias[0]
        logits = logits.at[:, mask_id].set(MASK_LOGIT)
        if s == S - 1:                                 # i == 0: greedy
            z_tm1 = jnp.argmax(logits, axis=-1).astype(jnp.int32)
        else:
            probs = jax.nn.softmax(logits, axis=-1) * (mct - mctm1)
            probs = probs.at[:, mask_id].set(mctm1)
            probs = probs / mct
            if min_p > 0.0:
                is_small = (probs < min_p).astype(jnp.float32)
                probs = (1.0 - is_small) * probs
                probs = probs / jnp.sum(probs, axis=-1, keepdims=True)
            gumbel_norm = 1e-10 - jnp.log(uniforms[s] + 1e-10)
            z_tm1 = jnp.argmax(probs / gumbel_norm, axis=-1).astype(jnp.int32)
        z = jnp.where(z != mask_id, z, z_tm1)
    return z.reshape(num_samples, max_length)


if __name__ == "__main__":
    B, L, V, H = 2, 16, 128, 32
    mask_id = V - 1
    t_eps = 1e-4
    num_steps = 4

    key = jax.random.PRNGKey(0)
    k1, k2, k3, k4 = jax.random.split(key, 4)
    emb = jax.random.normal(k1, (V, H), jnp.float32) * 0.05
    w = jax.random.normal(k2, (H, V), jnp.float32) * 0.05
    tbias = jax.random.normal(k3, (1, V), jnp.float32) * 0.05
    uniforms = jax.random.uniform(k4, (num_steps, B * L, V), jnp.float32)

    z_out = mdlm_generate(emb, w, tbias, num_samples=B, max_length=L,
                          num_denoising_steps=num_steps, mask_id=mask_id,
                          t_eps=t_eps, min_p=0.0, uniforms=uniforms)
    z_out = jax.block_until_ready(z_out)

    assert z_out.shape == (B, L) and z_out.dtype == jnp.int32
    assert bool(jnp.all((z_out >= 0) & (z_out < V)))
    assert not bool(jnp.any(z_out == mask_id))        # every position got denoised

    z_ref = mdlm_generate_reference(emb, w, tbias, uniforms, num_samples=B, max_length=L,
                                    num_denoising_steps=num_steps, mask_id=mask_id,
                                    t_eps=t_eps, min_p=0.0)
    agree = float(jnp.mean((z_out == z_ref).astype(jnp.float32)))
    assert agree >= 0.9, f"kernel/reference token agreement too low: {agree:.3f}"

    print("KERNEL_OK")
</pallas_src>

<mosaic_0001>
module attributes {stable_mosaic.version = 11 : i64} {
  func.func @mdlm_fused_kernel(%arg0: i32, %arg1: i32, %arg2: memref<128x128xbf16, #tpu.memory_space<vmem>>, %arg3: memref<1x128xf32, #tpu.memory_space<vmem>>, %arg4: memref<1x32x128xf32, #tpu.memory_space<vmem>>, %arg5: memref<4x4xf32, #tpu.memory_space<smem>>, %arg6: memref<32x1xi32, #tpu.memory_space<vmem>>) attributes {dimension_semantics = [#tpu.dimension_semantics<parallel>, #tpu.dimension_semantics<arbitrary>], iteration_bounds = array<i64: 1, 4>, scalar_prefetch = 0 : i64, scratch_operands = 0 : i64, tpu.core_type = #tpu.core_type<tc>, window_params = [{pipeline_mode = #tpu.pipeline_mode<synchronous>, transform_indices = @transform_0, window_bounds = array<i64: 128, 128>}, {pipeline_mode = #tpu.pipeline_mode<synchronous>, transform_indices = @transform_1, window_bounds = array<i64: 1, 128>}, {transform_indices = @transform_2, window_bounds = array<i64: 1, 32, 128>}, {transform_indices = @transform_3, window_bounds = array<i64: 4, 4>}, {transform_indices = @transform_4, window_bounds = array<i64: 32, 1>}]} {
    %c0_i32 = arith.constant 0 : i32
    %0 = arith.cmpi eq, %arg1, %c0_i32 : i32
    %1 = arith.extui %0 : i1 to i32
    %c0_i32_0 = arith.constant 0 : i32
    %2 = arith.cmpi ne, %1, %c0_i32_0 : i32
    scf.if %2 {
      %c127_i32_12 = arith.constant 127 : i32
      %31 = vector.broadcast %c127_i32_12 : i32 to vector<32x1xi32>
      %c0_13 = arith.constant 0 : index
      %c0_14 = arith.constant 0 : index
      %32 = vector.load %arg6[%c0_13, %c0_14] : memref<32x1xi32, #tpu.memory_space<vmem>>, vector<32x1xi32>
      tpu.vector_store %arg6[%c0_13, %c0_14], %31 {strides = array<i32>} : memref<32x1xi32, #tpu.memory_space<vmem>>, vector<32x1xi32>,
    } else {
    }
    %c0 = arith.constant 0 : index
    %c0_1 = arith.constant 0 : index
    %3 = vector.load %arg6[%c0, %c0_1] : memref<32x1xi32, #tpu.memory_space<vmem>>, vector<32x1xi32>
    %4 = tpu.iota {dimensions = array<i32: 1>} : vector<32x128xi32>
    %c127_i32 = arith.constant 127 : i32
    %5 = vector.broadcast %c127_i32 : i32 to vector<32x128xi32>
    %6 = arith.cmpi eq, %4, %5 : vector<32x128xi32>
    %7 = vector.broadcast %3 : vector<32x1xi32> to vector<32x128xi32>
    %8 = arith.cmpi eq, %4, %7 : vector<32x128xi32>
    %9 = arith.extui %8 : vector<32x128xi1> to vector<32x128xi32>
    %10 = arith.sitofp %9 : vector<32x128xi32> to vector<32x128xf32>
    %11 = arith.truncf %10 : vector<32x128xf32> to vector<32x128xbf16>
    %12 = arith.index_cast %arg1 : i32 to index
    %c0_2 = arith.constant 0 : index
    %13 = memref.load %arg5[%12, %c0_2] : memref<4x4xf32, #tpu.memory_space<smem>>
    %c0_3 = arith.constant 0 : index
    %c0_4 = arith.constant 0 : index
    %14 = vector.load %arg2[%c0_3, %c0_4] : memref<128x128xbf16, #tpu.memory_space<vmem>>, vector<128x128xbf16>
    %cst = arith.constant dense<0.000000e+00> : vector<32x128xf32>
    %15 = tpu.matmul %11, %14, %cst {dimension_numbers = #tpu.dot_dimension_numbers<[1], [0], [0], [1], [0, 0, 1, 1], [], []>} : vector<32x128xbf16>, vector<128x128xbf16>, vector<32x128xf32> -> vector<32x128xf32>
    %c0_5 = arith.constant 0 : index
    %c0_6 = arith.constant 0 : index
    %16 = vector.load %arg3[%c0_5, %c0_6] : memref<1x128xf32, #tpu.memory_space<vmem>>, vector<1x128xf32>
    %17 = vector.broadcast %13 : f32 to vector<1x128xf32>
    %18 = arith.mulf %17, %16 : vector<1x128xf32>
    %19 = vector.broadcast %18 : vector<1x128xf32> to vector<32x128xf32>
    %20 = arith.addf %15, %19 : vector<32x128xf32>
    %cst_7 = arith.constant -1.000000e+06 : f32
    %21 = vector.broadcast %cst_7 : f32 to vector<32x128xf32>
    %22 = arith.select %6, %21, %20 : vector<32x128xi1>, vector<32x128xf32>
    %c127_i32_8 = arith.constant 127 : i32
    %23 = vector.broadcast %c127_i32_8 : i32 to vector<32x1xi32>
    %24 = arith.cmpi ne, %3, %23 : vector<32x1xi32>
    %c3_i32 = arith.constant 3 : i32
    %25 = arith.cmpi eq, %arg1, %c3_i32 : i32
    %26 = arith.extui %25 : i1 to i32
    %c0_i32_9 = arith.constant 0 : i32
    %27 = arith.cmpi ne, %26, %c0_i32_9 : i32
    scf.if %27 {
      %cst_12 = arith.constant dense<0xFF800000> : vector<32xf32>
      %31 = vector.multi_reduction <maximumf>, %22, %cst_12 [1] : vector<32x128xf32> to vector<32xf32>
      %32 = vector.shape_cast %31 : vector<32xf32> to vector<32x1xf32>
      %33 = vector.broadcast %32 : vector<32x1xf32> to vector<32x128xf32>
      %34 = arith.cmpf oeq, %22, %33 : vector<32x128xf32>
      %c128_i32 = arith.constant 128 : i32
      %35 = vector.broadcast %c128_i32 : i32 to vector<32x128xi32>
      %36 = arith.select %34, %4, %35 : vector<32x128xi1>, vector<32x128xi32>
      %cst_13 = arith.constant dense<2147483647> : vector<32xi32>
      %37 = vector.multi_reduction <minsi>, %36, %cst_13 [1] : vector<32x128xi32> to vector<32xi32>
      %38 = vector.shape_cast %37 : vector<32xi32> to vector<32x1xi32>
      %39 = arith.select %24, %3, %38 : vector<32x1xi1>, vector<32x1xi32>
      %c0_14 = arith.constant 0 : index
      %c0_15 = arith.constant 0 : index
      %40 = vector.load %arg6[%c0_14, %c0_15] : memref<32x1xi32, #tpu.memory_space<vmem>>, vector<32x1xi32>
      tpu.vector_store %arg6[%c0_14, %c0_15], %39 {strides = array<i32>} : memref<32x1xi32, #tpu.memory_space<vmem>>, vector<32x1xi32>,
    } else {
    }
    %c3_i32_10 = arith.constant 3 : i32
    %28 = arith.cmpi slt, %arg1, %c3_i32_10 : i32
    %29 = arith.extui %28 : i1 to i32
    %c0_i32_11 = arith.constant 0 : i32
    %30 = arith.cmpi ne, %29, %c0_i32_11 : i32
    scf.if %30 {
      %31 = arith.index_cast %arg1 : i32 to index
      %c1 = arith.constant 1 : index
      %32 = memref.load %arg5[%31, %c1] : memref<4x4xf32, #tpu.memory_space<smem>>
      %33 = arith.index_cast %arg1 : i32 to index
      %c2 = arith.constant 2 : index
      %34 = memref.load %arg5[%33, %c2] : memref<4x4xf32, #tpu.memory_space<smem>>
      %cst_12 = arith.constant dense<0xFF800000> : vector<32xf32>
      %35 = vector.multi_reduction <maximumf>, %22, %cst_12 [1] : vector<32x128xf32> to vector<32xf32>
      %36 = vector.shape_cast %35 : vector<32xf32> to vector<32x1xf32>
      %37 = vector.broadcast %36 : vector<32x1xf32> to vector<32x128xf32>
      %38 = arith.subf %22, %37 : vector<32x128xf32>
      %39 = math.exp %38 : vector<32x128xf32>
      %cst_13 = arith.constant dense<0.000000e+00> : vector<32xf32>
      %40 = vector.multi_reduction <add>, %39, %cst_13 [1] : vector<32x128xf32> to vector<32xf32>
      %41 = vector.shape_cast %40 : vector<32xf32> to vector<32x1xf32>
      %42 = vector.broadcast %34 : f32 to vector<32x1xf32>
      %43 = arith.mulf %42, %41 : vector<32x1xf32>
      %44 = arith.subf %32, %34 : f32
      %45 = vector.broadcast %44 : f32 to vector<32x128xf32>
      %46 = arith.mulf %39, %45 : vector<32x128xf32>
      %47 = vector.shape_cast %43 : vector<32x1xf32> to vector<32x1xf32>
      %48 = vector.broadcast %47 : vector<32x1xf32> to vector<32x128xf32>
      %49 = arith.select %6, %48, %46 : vector<32x128xi1>, vector<32x128xf32>
      %c0_14 = arith.constant 0 : index
      %c0_15 = arith.constant 0 : index
      %c0_16 = arith.constant 0 : index
      %50 = vector.load %arg4[%c0_14, %c0_15, %c0_16] : memref<1x32x128xf32, #tpu.memory_space<vmem>>, vector<1x32x128xf32>
      %51 = vector.shape_cast %50 : vector<1x32x128xf32> to vector<32x128xf32>
      %cst_17 = arith.constant 1.000000e-10 : f32
      %52 = vector.broadcast %cst_17 : f32 to vector<32x128xf32>
      %53 = arith.addf %51, %52 : vector<32x128xf32>
      %54 = math.log %53 : vector<32x128xf32>
      %cst_18 = arith.constant 1.000000e-10 : f32
      %55 = vector.broadcast %cst_18 : f32 to vector<32x128xf32>
      %56 = arith.subf %55, %54 : vector<32x128xf32>
      %57 = arith.divf %49, %56 : vector<32x128xf32>
      %cst_19 = arith.constant dense<0xFF800000> : vector<32xf32>
      %58 = vector.multi_reduction <maximumf>, %57, %cst_19 [1] : vector<32x128xf32> to vector<32xf32>
      %59 = vector.shape_cast %58 : vector<32xf32> to vector<32x1xf32>
      %60 = vector.broadcast %59 : vector<32x1xf32> to vector<32x128xf32>
      %61 = arith.cmpf oeq, %57, %60 : vector<32x128xf32>
      %c128_i32 = arith.constant 128 : i32
      %62 = vector.broadcast %c128_i32 : i32 to vector<32x128xi32>
      %63 = arith.select %61, %4, %62 : vector<32x128xi1>, vector<32x128xi32>
      %cst_20 = arith.constant dense<2147483647> : vector<32xi32>
      %64 = vector.multi_reduction <minsi>, %63, %cst_20 [1] : vector<32x128xi32> to vector<32xi32>
      %65 = vector.shape_cast %64 : vector<32xi32> to vector<32x1xi32>
      %66 = arith.select %24, %3, %65 : vector<32x1xi1>, vector<32x1xi32>
      %c0_21 = arith.constant 0 : index
      %c0_22 = arith.constant 0 : index
      %67 = vector.load %arg6[%c0_21, %c0_22] : memref<32x1xi32, #tpu.memory_space<vmem>>, vector<32x1xi32>
      tpu.vector_store %arg6[%c0_21, %c0_22], %66 {strides = array<i32>} : memref<32x1xi32, #tpu.memory_space<vmem>>, vector<32x1xi32>,
    } else {
    }
    return
  }
  func.func @transform_0(%arg0: i32, %arg1: i32) -> (i32, i32) {
    %c0_i32 = arith.constant 0 : i32
    %c0_i32_0 = arith.constant 0 : i32
    %c0_i32_1 = arith.constant 0 : i32
    return %c0_i32, %c0_i32_0 : i32, i32
  }
  func.func @transform_1(%arg0: i32, %arg1: i32) -> (i32, i32) {
    %c0_i32 = arith.constant 0 : i32
    %c0_i32_0 = arith.constant 0 : i32
    %c0_i32_1 = arith.constant 0 : i32
    return %c0_i32, %c0_i32_0 : i32, i32
  }
  func.func @transform_2(%arg0: i32, %arg1: i32) -> (i32, i32, i32) {
    %c0_i32 = arith.constant 0 : i32
    %c0_i32_0 = arith.constant 0 : i32
    return %arg1, %arg0, %c0_i32 : i32, i32, i32
  }
  func.func @transform_3(%arg0: i32, %arg1: i32) -> (i32, i32) {
    %c0_i32 = arith.constant 0 : i32
    %c0_i32_0 = arith.constant 0 : i32
    %c0_i32_1 = arith.constant 0 : i32
    return %c0_i32, %c0_i32_0 : i32, i32
  }
  func.func @transform_4(%arg0: i32, %arg1: i32) -> (i32, i32) {
    %c0_i32 = arith.constant 0 : i32
    %c0_i32_0 = arith.constant 0 : i32
    return %arg0, %c0_i32 : i32, i32
  }
}

</mosaic_0001>

<bundles_post_ra>
// kernel: tpu_custom_call.1
= control target key start
LH: loop header
LB: loop body
LE: loop exit
PB: predicated region body
PF: predicated region fallthrough
CT: control target
= control target key end

     0   :  { %9 = vsyncpa [#allocation3], 0  ;;  %s1593_s0 = inlined_call_operand.hbm [shape: bf16[128,128], index: 0, kind: input, shape index: {}]   ;;  %s1594_s1 = inlined_call_operand.hbm [shape: f32[1,128], index: 1, kind: input, shape index: {}]   ;;  %s1595_s2 = inlined_call_operand.hbm [shape: f32[4,32,128], index: 2, kind: input, shape index: {}]   ;;  %s1596_s3 = inlined_call_operand.hbm [shape: f32[4,4], index: 3, kind: input, shape index: {}]   ;;  %s1597_s4 = inlined_call_operand.vmem [shape: s32[32,1], index: 4, kind: output, shape index: {}]  }
   0x1   :  { %10 = vsyncpa [#allocation6], 0 }
   0x2   :  { %11 = vsyncpa [#allocation4], 0  ;;  %s1228_s15 = smov 0   ;;  %s1230_s16 = smov 0  }
   0x3   :  { %s1232_s17 = smov 0   ;;  %s1234_s18 = smov 0  }
   0x4   :  { %s1236_s19 = smov 0   ;;  %s1238_s20 = smov 0  }
   0x5 LB: > { %s1598_s21 = sadd.s32 4294967295, %s1191_s20   ;;  %p93_p0 = scmp.ne.s32.totalorder %s1175_s16, %s1171_s15  ;;  %s1191_s20 = sphi %s1238_s20, %s17_s20   ;;  %s1187_s19 = sphi %s1236_s19, %s1616_s19   ;;  %s1183_s18 = sphi %s1234_s18, %s1615_s18   ;;  %s1179_s17 = sphi %s1232_s17, %s1614_s17   ;;  %s1175_s16 = sphi %s1230_s16, %s1613_s16   ;;  %s1171_s15 = sphi %s1228_s15, %s1612_s15  }
   0x6   : > { %p1260_p1 = scmp.eq.s32.totalorder %s1598_s21, 0  ;;  %p827_p2 = scmp.ge.s32.totalorder %s1191_s20, 1 }
   0x7   : > { %p151_p3 = scmp.lt.s32.totalorder %s1191_s20, 5  ;;  %s162_s26 = sshll.u32 %s1593_s0, 4  ;;  %s163_s26 = int_to_ptr.hbm [resolvable:$true] %s162_s26 }
   0x8   : > { %p1268_p4 = por %p1260_p1, %p93_p0  ;;  %s1193_s28 = smov [#allocation2]  }
   0x9   : > { %p1275_p5 = pnand %p827_p2, %p151_p3  ;;  %s164_s29 = sshll.u32 %s1193_s28, 4  ;;  %s165_s29 = int_to_ptr.vmem [resolvable:$true] %s164_s29 }
   0xa   : > { %s177_s6 = sshll.u32 %s1594_s1, 4  ;;  %s1194_s7 = smov 64   ;;  %s178_s6 = int_to_ptr.hbm [resolvable:$true] %s177_s6 }
   0xb   : > { %p919_p6 = pneg %p1275_p5  ;;  %s1195_s8 = smov 4  }
   0xc   : > { %s1196_s9 = smov [#allocation5]   ;;  %s189_s13 = sshll.u32 %s1596_s3, 4  ;;  %s190_s13 = int_to_ptr.hbm [resolvable:$true] %s189_s13 }
   0xd   : > { %p920_p7 = pnand %p919_p6, %p1260_p1  ;;  %s179_s10 = sshll.u32 %s1196_s9, 4  ;;  %s180_s10 = int_to_ptr.vmem [resolvable:$true] %s179_s10 }
   0xe   : > { %s1197_s14 = smov [#allocation8]   ;;  %s80_s15 = sadd.s32 1, %s1179_s17 }
   0xf   : > { %922 = dma.hbm_to_vmem [thread:$0]  (!%p920_p7), %s163_s26, 1024, %s165_s29, [#allocation3], %s1194_s7, %s1194_s7, %s1195_s8  }
  0x10   : > { %925 = dma.hbm_to_vmem [thread:$0]  (!%p920_p7), %s178_s6, 16, %s180_s10, [#allocation6]  }
  0x11   : > { %928 = dma.hbm_to_smem (!%p920_p7), %s190_s13, 64, %s1197_s14, [#allocation4]  }
  0x12   : > { %s26_s24 = sadd.s32 1, %s1187_s19  ;;  %p87_p8 = scmp.ne.s32.totalorder %s1179_s17, %s1175_s16 }
  0x13   : > { %p27_p9 = scmp.ge.s32.totalorder %s26_s24, 4  ;;  %p88_p10 = scmp.eq.s32.totalorder %s1191_s20, 0 }
  0x14   : > { %p936_p11 = scmp.lt.s32.totalorder %s1191_s20, 4  ;;  %s200_s25 = sand.u32 1, %s1191_s20  }
  0x15   : > { %s1618_s24 = smov (%p27_p9, %s26_s24), 0  ;;  %p1298_p12 = por %p88_p10, %p87_p8 }
  0x16   : > { %s75_s28 = ssub.s32 %s1187_s19, %s1618_s24  ;;  %s202_s29 = sand.u32 1, %s1179_s17  }
  0x17   : > { %p78_p13 = scmp.eq.s32.totalorder %s75_s28, 0  ;;  %s832_s30 = sshll.u32 %s202_s29, 5 }
  0x18   : > { %s888_s5 = sshll.u32 %s1187_s19, 5  ;;  %s204_s10 = scalar_lea.vmem [#allocation7], %s832_s30 }
  0x19   : > { %s1307_s6 = scalar_select %p78_p13, %s1179_s17, %s80_s15  }
  0x1a   : > { %s211_s9 = scalar_lea.hbm %s1595_s2, %s888_s5  ;;  %s214_s11 = sshll.u32 %s204_s10, 4  ;;  %s215_s11 = int_to_ptr.vmem [resolvable:$true] %s214_s11 }
  0x1b   : > { %s212_s12 = sshll.u32 %s211_s9, 4  ;;  %p930_p0 = pnand %p936_p11, %p1298_p12  ;;  %s213_s12 = int_to_ptr.hbm [resolvable:$true] %s212_s12 }
  0x1c   : > { %s201_s13 = scalar_lea.sflag [#allocation3], %s200_s25  ;;  %s1198_s14 = smov 128  }
  0x1d   : > { %s1199_s21 = smov 8   ;;  %226 = sbr.rel (%p1275_p5) target bundleno = 1323 (0x52b), region = 36 }
  0x1e   : > { %932 = dma.hbm_to_vmem [thread:$0]  (!%p930_p0), %s213_s12, 512, %s215_s11, %s201_s13, %s1198_s14, %s1198_s14, %s1199_s21  }
  0x22   : > { %1154 = dma.done.wait (%p1260_p1), [#allocation3], 1024  }
  0x23   : > { %1156 = vsyncadd (%p1260_p1), [#allocation3], 4294966272 }
  0x24   : > { %1158 = dma.done.wait (%p1260_p1), [#allocation6], 16  }
  0x25   : > { %1160 = vsyncadd (%p1260_p1), [#allocation6], 4294967280  ;;  %s1603_s15 = sadd.s32 4294967295, %s1191_s20   ;;  %s240_s25 = sand.u32 1, %s1175_s16  }
  0x26   : > { %s238_s21 = sand.u32 1, %s1603_s15   ;;  %s838_s27 = sshll.u32 %s240_s25, 5 }
  0x27   : > { %s239_s26 = scalar_lea.sflag [#allocation3], %s238_s21  ;;  %s1329_s28 = scalar_lea.vmem [#allocation7], %s838_s27 }
  0x28   : > { %1162 = dma.done.wait (%p1268_p4), %s239_s26, 512  }
  0x29   : > { %1164 = vsyncadd (%p1268_p4), %s239_s26, 4294966784 }
  0x2a   : > { %1166 = dma.done.wait (%p1260_p1), [#allocation4], 64  }
  0x2b   : > { %1168 = vsyncadd (%p1260_p1), [#allocation4], 4294967232 }
  0x2c   : > { %253 = sfence }
  0x2d   : > { %p840_p2 = scmp.ne.s32.totalorder %s1183_s18, 0 }
  0x2f   : > { %284 = sbr.rel (%p840_p2) target bundleno = 57 (0x39), region = 56 }
  0x34   : > { %vm285_vm0 = vcmask 7168   ;;  %v1200_v0 = vmov 127  }
  0x35   : > { %286 = vst.msk [vmem:[%s1597_s4] sm:$0xff] %vm285_vm0, %v1200_v0 }
  0x36   : > { %287 = vst.msk [vmem:[%s1597_s4 + $0x8] sm:$0xff] %vm285_vm0, %v1200_v0 }
  0x37   : > { %288 = vst.msk [vmem:[%s1597_s4 + $0x10] sm:$0xff] %vm285_vm0, %v1200_v0 }
  0x38   : > { %289 = vst.msk [vmem:[%s1597_s4 + $0x18] sm:$0xff] %vm285_vm0, %v1200_v0 }
  0x39 PF: > { %v1201_v4 = vmov 0   ;;  %v896_v6 = vld [vmem:[#allocation2 + $0x38] sm:$0xff]  ;;  %v895_v7 = vld [vmem:[#allocation2 + $0x30] sm:$0xff]  ;;  %v894_v8 = vld [vmem:[#allocation2 + $0x28] sm:$0xff]  ;;  %v294_v16 = vlaneseq  ;;  %v1202_v20 = vmov 1.0|1.0  }
  0x3a   : > { %999 = vset.pattern.permute.xlu1 %v1201_v4  ;;  %998 = vset.pattern.permute.xlu0 %v1201_v4  ;;  %v893_v9 = vld [vmem:[#allocation2 + $0x20] sm:$0xff]  ;;  %v892_v10 = vld [vmem:[#allocation2 + $0x18] sm:$0xff]  ;;  %v891_v11 = vld [vmem:[#allocation2 + $0x10] sm:$0xff]  ;;  %s1387_s27 = sshll.u32 %s1183_s18, 7  ;;  %p882_p1 = scmp.ne.s32.totalorder %s1183_s18, 3 }
  0x3b   : > { %395 = vmatpush.bf16.msra.mxu0 %v896_v6  ;;  %897 = vmatpush.bf16.msra.mxu1 %v896_v6  ;;  %v890_v12 = vld [vmem:[#allocation2 + $0x8] sm:$0xff]  ;;  %v889_v13 = vld [vmem:[#allocation2] sm:$0xff]  ;;  %v1380_v17 = vand.u32 127, %v294_v16  ;;  %s324_s26 = sld [smem:[#allocation8 + %s1387_s27]] }
  0x3c   : > { %v1360_v2 = vld [vmem:[%s1597_s4] sm:$0xff] }
  0x3d   : > { %vm418_vm2 = vcmp.ne.s32.totalorder %v1360_v2, 127  ;;  %v1373_v5 = vld [vmem:[%s1597_s4 + $0x8] sm:$0xff]  ;;  %298 = vperm.xlu0 %998, %v1360_v2   ;;  %v341_v21 = vld [vmem:[#allocation5] sm:$0x1]  ;;  %vm296_vm11 = vcmp.eq.s32.totalorder %v1380_v17, 127 }
  0x3e   : > { %v1355_v1 = vld [vmem:[%s1597_s4 + $0x10] sm:$0xff]  ;;  %vm419_vm4 = vcmp.ne.s32.totalorder %v1373_v5, 127 }
  0x3f   : > { %v1365_v3 = vld [vmem:[%s1597_s4 + $0x18] sm:$0xff]  ;;  %vm420_vm1 = vcmp.ne.s32.totalorder %v1355_v1, 127  ;;  %304 = vperm.xlu1 %999, %v1355_v1   ;;  %396 = vmatpush.bf16.msra.mxu0 %v895_v7 }
  0x40   : > { %vm421_vm3 = vcmp.ne.s32.totalorder %v1365_v3, 127  ;;  %898 = vmatpush.bf16.msra.mxu1 %v895_v7 }
  0x41   : > { %v342_v22 = vstv %s324_s26 }
  0x42   : > { %v343_v23 = vmul.f32 %v342_v22, %v341_v21 }
  0x43   : > { %397 = vmatpush.bf16.msra.mxu0 %v894_v8 }
  0x44   : > { %899 = vmatpush.bf16.msra.mxu1 %v894_v8  ;;  %v345_v24 = vperm.slane %v343_v23, 0 }
  0x45   : > { %301 = vperm.xlu0 %998, %v1373_v5  }
  0x47   : > { %307 = vperm.xlu1 %999, %v1365_v3   ;;  %398 = vmatpush.bf16.msra.mxu0 %v893_v9 }
  0x48   : > { %900 = vmatpush.bf16.msra.mxu1 %v893_v9 }
  0x4b   : > { %399 = vmatpush.bf16.msra.mxu0 %v892_v10 }
  0x4c   : > { %901 = vmatpush.bf16.msra.mxu1 %v892_v10 }
  0x4f   : > { %400 = vmatpush.bf16.msra.mxu0 %v891_v11 }
  0x50   : > { %902 = vmatpush.bf16.msra.mxu1 %v891_v11 }
  0x53   : > { %401 = vmatpush.bf16.msra.mxu0 %v890_v12 }
  0x54   : > { %903 = vmatpush.bf16.msra.mxu1 %v890_v12 }
  0x57   : > { %402 = vmatpush.bf16.msra.mxu0 %v889_v13 }
  0x58   : > { %904 = vmatpush.bf16.msra.mxu1 %v889_v13 }
  0xaf   : > { %v299_v15 = vpop.permute.xlu0 %298 }
  0xb0   : > { %vm309_vm8 = vcmp.eq.s32.totalorder %v1380_v17, %v299_v15 }
  0xb1   : > { %v305_v14 = vpop.permute.xlu1 %304 }
  0xb2   : > { %vm311_vm5 = vcmp.eq.s32.totalorder %v1380_v17, %v305_v14 }
  0xb7   : > { %v302_v19 = vpop.permute.xlu0 %301 }
  0xb8   : > { %vm310_vm7 = vcmp.eq.s32.totalorder %v1380_v17, %v302_v19 }
  0xb9   : > { %v308_v18 = vpop.permute.xlu1 %307  ;;  %vm878_vm10 = vmpackc.low %vm310_vm7, %vm309_vm8 }
  0xba   : > { %vm312_vm6 = vcmp.eq.s32.totalorder %v1380_v17, %v308_v18  ;;  %879 = vmatmul.msk.bf16.vlgmr.msra.gmra.mxu0 %vm878_vm10, %v1202_v20 }
  0xbb   : > { %vm880_vm9 = vmpackc.low %vm312_vm6, %vm311_vm5 }
  0xbc   : > { %881 = vmatmul.msk.bf16.vlgmr.msra.gmra.mxu1 %vm880_vm9, %v1202_v20 }
 0x137   : > { %v404_v26 = vpop.f32.mrf.mxu0 }
 0x138   : > { %v405_v28 = vadd.f32 %v404_v26, %v345_v24 }
 0x139   : > { %v409_v25 = vpop.f32.mrf.mxu1 }
 0x13a   : > { %v410_v27 = vadd.f32 %v409_v25, %v345_v24  ;;  %v1397_v30 = vsel %vm296_vm11, -1000000.0, %v405_v28 }
 0x13c   : > { %v1393_v29 = vsel %vm296_vm11, -1000000.0, %v410_v27 }
 0x13f   : > { %v406_v32 = vpop.f32.mrf.mxu0 }
 0x140   : > { %v407_v34 = vadd.f32 %v406_v32, %v345_v24  ;;  %425 = sbr.rel (%p882_p1) target bundleno = 696 (0x2b8), region = 60 }
 0x141   : > { %v411_v31 = vpop.f32.mrf.mxu1 }
 0x142   : > { %v412_v33 = vadd.f32 %v411_v31, %v345_v24  ;;  %v1405_v36 = vsel %vm296_vm11, -1000000.0, %v407_v34 }
 0x144   : > { %v1401_v35 = vsel %vm296_vm11, -1000000.0, %v412_v33 }
 0x145   : > { %430 = vmax.xlane.f32.xlu1 %v1393_v29  ;;  %426 = vmax.xlane.f32.xlu0 %v1397_v30  ;;  %vm502_vm8 = vcmask 7168  }
 0x14d   : > { %432 = vmax.xlane.f32.xlu1 %v1401_v35  ;;  %428 = vmax.xlane.f32.xlu0 %v1405_v36 }
 0x1b8   : > { %v431_v37 = vpop.xlane.xlu1 %430  ;;  %v427_v38 = vpop.xlane.xlu0 %426 }
 0x1b9   : > { %vm436_vm12 = vcmp.eq.f32.partialorder %v1393_v29, %v431_v37  ;;  %vm434_vm13 = vcmp.eq.f32.partialorder %v1397_v30, %v427_v38 }
 0x1ba   : > { %v440_v39 = vsel %vm436_vm12, %v1380_v17, 128  ;;  %v438_v40 = vsel %vm434_vm13, %v1380_v17, 128 }
 0x1bb   : > { %v471_v41 = vshra.s32 %v440_v39, 16  ;;  %v443_v42 = vshra.s32 %v438_v40, 16  ;;  %v470_v53 = vand.u32 65535, %v440_v39  ;;  %v442_v54 = vand.u32 65535, %v438_v40 }
 0x1bd   : > { %v473_v43 = vcvt.s32.f32 %v471_v41  ;;  %v445_v44 = vcvt.s32.f32 %v443_v42  ;;  %v472_v55 = vcvt.s32.f32 %v470_v53  ;;  %v444_v56 = vcvt.s32.f32 %v442_v54 }
 0x1bf   : > { %474 = vmin.xlane.f32.xlu0 %v473_v43  ;;  %446 = vmin.xlane.f32.xlu2 %v445_v44 }
 0x1c0   : > { %v433_v45 = vpop.xlane.xlu1 %432  ;;  %v429_v46 = vpop.xlane.xlu0 %428 }
 0x1c1   : > { %vm437_vm14 = vcmp.eq.f32.partialorder %v1401_v35, %v433_v45  ;;  %vm435_vm15 = vcmp.eq.f32.partialorder %v1405_v36, %v429_v46 }
 0x1c2   : > { %v441_v47 = vsel %vm437_vm14, %v1380_v17, 128  ;;  %v439_v48 = vsel %vm435_vm15, %v1380_v17, 128 }
 0x1c3   : > { %v485_v49 = vshra.s32 %v441_v47, 16  ;;  %v457_v50 = vshra.s32 %v439_v48, 16  ;;  %v484_v61 = vand.u32 65535, %v441_v47  ;;  %v456_v62 = vand.u32 65535, %v439_v48 }
 0x1c5   : > { %v487_v51 = vcvt.s32.f32 %v485_v49  ;;  %v459_v52 = vcvt.s32.f32 %v457_v50  ;;  %v486_v63 = vcvt.s32.f32 %v484_v61  ;;  %v458_v0 = vcvt.s32.f32 %v456_v62 }
 0x1c7   : > { %488 = vmin.xlane.f32.xlu1 %v487_v51  ;;  %460 = vmin.xlane.f32.xlu2 %v459_v52 }
 0x232   : > { %v447_v57 = vpop.xlane.xlu2 %446  ;;  %v475_v58 = vpop.xlane.xlu0 %474 }
 0x233   : > { %vm448_vm0 = vcmp.eq.f32.partialorder %v445_v44, %v447_v57  ;;  %vm476_vm5 = vcmp.eq.f32.partialorder %v473_v43, %v475_v58  ;;  %v453_v9 = vcvt.f32.s32 %v447_v57  ;;  %v481_v10 = vcvt.f32.s32 %v475_v58 }
 0x234   : > { %v449_v59 = vsel %vm448_vm0, %v444_v56, inf  ;;  %v477_v60 = vsel %vm476_vm5, %v472_v55, inf }
 0x235   : > { %450 = vmin.xlane.f32.xlu2 %v449_v59  ;;  %478 = vmin.xlane.f32.xlu1 %v477_v60  ;;  %v454_v13 = vshll.u32 %v453_v9, 16  ;;  %v482_v14 = vshll.u32 %v481_v10, 16 }
 0x23a   : > { %v489_v4 = vpop.xlane.xlu1 %488  ;;  %v461_v6 = vpop.xlane.xlu2 %460 }
 0x23b   : > { %vm490_vm6 = vcmp.eq.f32.partialorder %v487_v51, %v489_v4  ;;  %vm462_vm7 = vcmp.eq.f32.partialorder %v459_v52, %v461_v6  ;;  %v495_v20 = vcvt.f32.s32 %v489_v4  ;;  %v467_v21 = vcvt.f32.s32 %v461_v6 }
 0x23c   : > { %v491_v7 = vsel %vm490_vm6, %v486_v63, inf  ;;  %v463_v8 = vsel %vm462_vm7, %v458_v0, inf }
 0x23d   : > { %492 = vmin.xlane.f32.xlu2 %v491_v7  ;;  %464 = vmin.xlane.f32.xlu0 %v463_v8  ;;  %v496_v26 = vshll.u32 %v495_v20, 16  ;;  %v468_v27 = vshll.u32 %v467_v21, 16 }
 0x2a8   : > { %v451_v11 = vpop.xlane.xlu2 %450  ;;  %v479_v12 = vpop.xlane.xlu1 %478 }
 0x2a9   : > { %v452_v15 = vcvt.f32.s32 %v451_v11  ;;  %v480_v16 = vcvt.f32.s32 %v479_v12 }
 0x2ab   : > { %v455_v18 = vadd.s32 %v454_v13, %v452_v15  ;;  %v483_v19 = vadd.s32 %v482_v14, %v480_v16 }
 0x2ad   : > { %v498_v22 = vsel %vm418_vm2, %v1360_v2, %v455_v18  ;;  %v500_v23 = vsel %vm420_vm1, %v1355_v1, %v483_v19 }
 0x2ae   : > { %503 = vst.msk [vmem:[%s1597_s4] sm:$0xff] %vm502_vm8, %v498_v22 }
 0x2af   : > { %505 = vst.msk [vmem:[%s1597_s4 + $0x10] sm:$0xff] %vm502_vm8, %v500_v23 }
 0x2b0   : > { %v493_v24 = vpop.xlane.xlu2 %492  ;;  %v465_v25 = vpop.xlane.xlu0 %464 }
 0x2b1   : > { %v494_v28 = vcvt.f32.s32 %v493_v24  ;;  %v466_v31 = vcvt.f32.s32 %v465_v25 }
 0x2b3   : > { %v497_v32 = vadd.s32 %v496_v26, %v494_v28  ;;  %v469_v33 = vadd.s32 %v468_v27, %v466_v31 }
 0x2b5   : > { %v501_v34 = vsel %vm421_vm3, %v1365_v3, %v497_v32  ;;  %v499_v37 = vsel %vm419_vm4, %v1373_v5, %v469_v33 }
 0x2b6   : > { %506 = vst.msk [vmem:[%s1597_s4 + $0x18] sm:$0xff] %vm502_vm8, %v501_v34 }
 0x2b7   : > { %504 = vst.msk [vmem:[%s1597_s4 + $0x8] sm:$0xff] %vm502_vm8, %v499_v37 }
 0x2b8 PF: > { %p883_p3 = scmp.ge.s32.totalorder %s1183_s18, 3 }
 0x2b9   : > { %s513_s18 = sadd.s32 (!%p883_p3), 2, %s1387_s27 }
 0x2ba   : > { %510 = sbr.rel (%p883_p3) target bundleno = 1323 (0x52b), region = 64  ;;  %s1481_s10 = sld [smem:[#allocation8 + %s513_s18]] (!%p883_p3) }
 0x2bf   : > { %519 = vmax.xlane.f32.xlu1 %v1393_v29  ;;  %515 = vmax.xlane.f32.xlu0 %v1397_v30  ;;  %v561_v54 = vld [vmem:[%s1329_s28 + $0x18] sm:$0xff]  ;;  %v559_v55 = vld [vmem:[%s1329_s28 + $0x8] sm:$0xff] }
 0x2c0   : > { %v565_v57 = vadd.f32 1e-10, %v561_v54  ;;  %v563_v59 = vadd.f32 1e-10, %v559_v55 }
 0x2c7   : > { %521 = vmax.xlane.f32.xlu1 %v1401_v35  ;;  %517 = vmax.xlane.f32.xlu0 %v1405_v36 }
 0x332   : > { %v520_v38 = vpop.xlane.xlu1 %519  ;;  %v516_v39 = vpop.xlane.xlu0 %515 }
 0x333   : > { %v525_v40 = vsub.f32 %v1393_v29, %v520_v38  ;;  %v523_v41 = vsub.f32 %v1397_v30, %v516_v39 }
 0x335   : > { %v531_v42 = vmul.f32 1.442695, %v525_v40  ;;  %v527_v43 = vmul.f32 1.442695, %v523_v41 }
 0x337   : > { %1000 = vpow2.f32 %v531_v42  ;;  %v543_v42 = vstv %s1481_s10 }
 0x338   : > { %1002 = vpow2.f32 %v527_v43 }
 0x33a   : > { %v522_v44 = vpop.xlane.xlu1 %521  ;;  %v518_v45 = vpop.xlane.xlu0 %517 }
 0x33b   : > { %v526_v46 = vsub.f32 %v1401_v35, %v522_v44  ;;  %v524_v47 = vsub.f32 %v1405_v36, %v518_v45  ;;  %v560_v35 = vld [vmem:[%s1329_s28 + $0x10] sm:$0xff]  ;;  %v558_v36 = vld [vmem:[%s1329_s28] sm:$0xff]  ;;  %s511_s28 = sadd.s32 1, %s1387_s27 }
 0x33c   : > { %v564_v52 = vadd.f32 1e-10, %v560_v35  ;;  %v562_v53 = vadd.f32 1e-10, %v558_v36  ;;  %s512_s11 = sld [smem:[#allocation8 + %s511_s28]] }
 0x33d   : > { %v1457_v48 = vpop.eup %1000  ;;  %v533_v49 = vmul.f32 1.442695, %v526_v46  ;;  %v529_v50 = vmul.f32 1.442695, %v524_v47 }
 0x33e   : > { %v1459_v29 = vpop.eup %1002  ;;  %539 = vadd.xlane.f32.xlu0 %v1457_v48 }
 0x33f   : > { %1004 = vpow2.f32 %v533_v49  ;;  %535 = vadd.xlane.f32.xlu2 %v1459_v29 }
 0x340   : > { %1006 = vpow2.f32 %v529_v50 }
 0x341   : > { %1008 = vlog2.f32 %v564_v52 }
 0x342   : > { %1010 = vlog2.f32 %v562_v53  ;;  %s548_s12 = ssub.f32 %s512_s11, %s1481_s10 }
 0x343   : > { %1012 = vlog2.f32 %v565_v57 }
 0x344   : > { %1014 = vlog2.f32 %v563_v59  ;;  %v549_v37 = vstv %s548_s12 }
 0x345   : > { %v1463_v30 = vpop.eup %1004  ;;  %v552_v44 = vmul.f32 %v1457_v48, %v549_v37  ;;  %v550_v45 = vmul.f32 %v1459_v29, %v549_v37 }
 0x346   : > { %v1465_v51 = vpop.eup %1006  ;;  %541 = vadd.xlane.f32.xlu1 %v1463_v30 }
 0x347   : > { %537 = vadd.xlane.f32.xlu2 %v1465_v51  ;;  %v1009_v56 = vpop.eup %1008 }
 0x348   : > { %v1011_v58 = vpop.eup %1010  ;;  %v571_v60 = vmul.f32 0.6931472, %v1009_v56 }
 0x349   : > { %v567_v61 = vmul.f32 0.6931472, %v1011_v58  ;;  %v1013_v0 = vpop.eup %1012 }
 0x34a   : > { %v576_v62 = vsub.f32 1e-10, %v571_v60  ;;  %v1015_v4 = vpop.eup %1014  ;;  %v573_v6 = vmul.f32 0.6931472, %v1013_v0 }
 0x34b   : > { %v574_v63 = vsub.f32 1e-10, %v567_v61  ;;  %v569_v7 = vmul.f32 0.6931472, %v1015_v4 }
 0x34c   : > { %1016 = vrcp.f32 %v576_v62  ;;  %v1473_v9 = vsub.f32 1e-10, %v573_v6  ;;  %vm613_vm9 = vweird.f32 %v576_v62  ;;  %v619_v23 = vand.u32 2147483648, %v576_v62 }
 0x34d   : > { %1018 = vrcp.f32 %v574_v63  ;;  %v1475_v11 = vsub.f32 1e-10, %v569_v7  ;;  %vm583_vm12 = vweird.f32 %v574_v63  ;;  %v589_v24 = vand.u32 2147483648, %v574_v63 }
 0x34e   : > { %1020 = vrcp.f32 %v1473_v9  ;;  %v617_v27 = vand.u32 2147483647, %v576_v62  ;;  %v587_v31 = vand.u32 2147483647, %v574_v63  ;;  %v620_v38 = vor.u32 1.1754944e-38, %v619_v23 }
 0x34f   : > { %1022 = vrcp.f32 %v1475_v11  ;;  %v590_v39 = vor.u32 1.1754944e-38, %v589_v24  ;;  %vm628_vm6 = vweird.f32 %v1473_v9  ;;  %vm598_vm8 = vweird.f32 %v1475_v11 }
 0x350   : > { %vm618_vm0 = vcmp.eq.f32.partialorder %v617_v27, 8.507059e+37  ;;  %vm588_vm5 = vcmp.eq.f32.partialorder %v587_v31, 8.507059e+37  ;;  %v634_v52 = vand.u32 2147483648, %v1473_v9  ;;  %v604_v29 = vand.u32 2147483648, %v1475_v11 }
 0x351   : > { %v632_v54 = vand.u32 2147483647, %v1473_v9  ;;  %v602_v57 = vand.u32 2147483647, %v1475_v11 }
 0x352   : > { %v1017_v8 = vpop.eup %1016  ;;  %v605_v0 = vor.u32 1.1754944e-38, %v604_v29 }
 0x353   : > { %v1019_v10 = vpop.eup %1018  ;;  %v609_v12 = vmul.f32 %v1017_v8, %v576_v62  ;;  %vm614_vm10 = vweird.f32 %v1017_v8 }
 0x354   : > { %v579_v13 = vmul.f32 %v1019_v10, %v574_v63  ;;  %v1483_v16 = vpop.eup %1020  ;;  %vm584_vm13 = vweird.f32 %v1019_v10  ;;  %vm1492_vm14 = vmor %vm613_vm9, %vm614_vm10  ;;  %v635_v63 = vor.u32 1.1754944e-38, %v634_v52 }
 0x355   : > { %v610_v14 = vsub.f32 1.0, %v609_v12  ;;  %v1485_v18 = vpop.eup %1022  ;;  %v624_v21 = vmul.f32 %v1483_v16, %v1473_v9  ;;  %vm1496_vm15 = vmor %vm583_vm12, %vm584_vm13  ;;  %vm629_vm7 = vweird.f32 %v1483_v16  ;;  %vm633_vm13 = vcmp.eq.f32.partialorder %v632_v54, 8.507059e+37 }
 0x356   : > { %v580_v15 = vsub.f32 1.0, %v579_v13  ;;  %v594_v22 = vmul.f32 %v1485_v18, %v1475_v11  ;;  %vm599_vm9 = vweird.f32 %v1485_v18  ;;  %vm1521_vm10 = vmor %vm628_vm6, %vm629_vm7  ;;  %v551_v13 = vmul.f32 %v1465_v51, %v549_v37 }
 0x357   : > { %v611_v19 = vmul.f32 %v1017_v8, %v610_v14  ;;  %v625_v33 = vsub.f32 1.0, %v624_v21  ;;  %vm1527_vm12 = vmor %vm598_vm8, %vm599_vm9 }
 0x358   : > { %v581_v20 = vmul.f32 %v1019_v10, %v580_v15  ;;  %v595_v34 = vsub.f32 1.0, %v594_v22 }
 0x359   : > { %v612_v25 = vadd.f32 %v1017_v8, %v611_v19  ;;  %v626_v43 = vmul.f32 %v1483_v16, %v625_v33 }
 0x35a   : > { %v582_v28 = vadd.f32 %v1019_v10, %v581_v20  ;;  %v596_v46 = vmul.f32 %v1485_v18, %v595_v34 }
 0x35b   : > { %v616_v40 = vsel %vm1492_vm14, %v1017_v8, %v612_v25  ;;  %v627_v53 = vadd.f32 %v1483_v16, %v626_v43  ;;  %vm603_vm14 = vcmp.eq.f32.partialorder %v602_v57, 8.507059e+37 }
 0x35c   : > { %v586_v41 = vsel %vm1496_vm15, %v1019_v10, %v582_v28  ;;  %v621_v49 = vsel %vm618_vm0, %v620_v38, %v616_v40  ;;  %v597_v56 = vadd.f32 %v1485_v18, %v596_v46  ;;  %v553_v10 = vmul.f32 %v1463_v30, %v549_v37 }
 0x35d   : > { %v591_v50 = vsel %vm588_vm5, %v590_v39, %v586_v41  ;;  %v631_v4 = vsel %vm1521_vm10, %v1483_v16, %v627_v53  ;;  %vm714_vm10 = vcmask 7168  }
 0x35e   : > { %v601_v6 = vsel %vm1527_vm12, %v1485_v18, %v597_v56  ;;  %v636_v11 = vsel %vm633_vm13, %v635_v63, %v631_v4 }
 0x35f   : > { %v606_v14 = vsel %vm603_vm14, %v605_v0, %v601_v6 }
 0x3b1   : > { %v540_v47 = vpop.xlane.xlu0 %539 }
 0x3b2   : > { %v536_v35 = vpop.xlane.xlu2 %535  ;;  %v546_v36 = vmul.f32 %v543_v42, %v540_v47 }
 0x3b3   : > { %v544_v48 = vmul.f32 %v543_v42, %v536_v35 }
 0x3b4   : > { %v556_v55 = vsel %vm296_vm11, %v546_v36, %v552_v44 }
 0x3b5   : > { %v622_v59 = vmul.f32 %v621_v49, %v556_v55  ;;  %v554_v60 = vsel %vm296_vm11, %v544_v48, %v550_v45 }
 0x3b6   : > { %v592_v62 = vmul.f32 %v591_v50, %v554_v60 }
 0x3b7   : > { %642 = vmax.xlane.f32.xlu1 %v622_v59 }
 0x3b8   : > { %638 = vmax.xlane.f32.xlu2 %v592_v62 }
 0x3b9   : > { %v542_v7 = vpop.xlane.xlu1 %541 }
 0x3ba   : > { %v547_v8 = vmul.f32 %v543_v42, %v542_v7  ;;  %v538_v9 = vpop.xlane.xlu2 %537 }
 0x3bb   : > { %v545_v12 = vmul.f32 %v543_v42, %v538_v9 }
 0x3bc   : > { %v557_v15 = vsel %vm296_vm11, %v547_v8, %v553_v10 }
 0x3bd   : > { %v555_v16 = vsel %vm296_vm11, %v545_v12, %v551_v13  ;;  %v637_v19 = vmul.f32 %v636_v11, %v557_v15 }
 0x3be   : > { %v607_v20 = vmul.f32 %v606_v14, %v555_v16 }
 0x3c0   : > { %640 = vmax.xlane.f32.xlu0 %v607_v20  ;;  %644 = vmax.xlane.f32.xlu2 %v637_v19 }
 0x42a   : > { %v643_v18 = vpop.xlane.xlu1 %642 }
 0x42b   : > { %vm648_vm15 = vcmp.eq.f32.partialorder %v622_v59, %v643_v18  ;;  %v639_v21 = vpop.xlane.xlu2 %638 }
 0x42c   : > { %v652_v30 = vsel %vm648_vm15, %v1380_v17, 128  ;;  %vm646_vm0 = vcmp.eq.f32.partialorder %v592_v62, %v639_v21 }
 0x42d   : > { %v683_v22 = vshra.s32 %v652_v30, 16  ;;  %v650_v51 = vsel %vm646_vm0, %v1380_v17, 128  ;;  %v682_v38 = vand.u32 65535, %v652_v30 }
 0x42e   : > { %v655_v23 = vshra.s32 %v650_v51, 16  ;;  %v654_v39 = vand.u32 65535, %v650_v51 }
 0x42f   : > { %v685_v24 = vcvt.s32.f32 %v683_v22  ;;  %v684_v40 = vcvt.s32.f32 %v682_v38 }
 0x430   : > { %v657_v25 = vcvt.s32.f32 %v655_v23  ;;  %v656_v42 = vcvt.s32.f32 %v654_v39 }
 0x431   : > { %686 = vmin.xlane.f32.xlu2 %v685_v24 }
 0x432   : > { %658 = vmin.xlane.f32.xlu0 %v657_v25 }
 0x433   : > { %v641_v26 = vpop.xlane.xlu0 %640  ;;  %v645_v27 = vpop.xlane.xlu2 %644 }
 0x434   : > { %vm647_vm11 = vcmp.eq.f32.partialorder %v607_v20, %v641_v26  ;;  %vm649_vm5 = vcmp.eq.f32.partialorder %v637_v19, %v645_v27 }
 0x435   : > { %v651_v28 = vsel %vm647_vm11, %v1380_v17, 128  ;;  %v653_v31 = vsel %vm649_vm5, %v1380_v17, 128 }
 0x436   : > { %v669_v32 = vshra.s32 %v651_v28, 16  ;;  %v697_v33 = vshra.s32 %v653_v31, 16  ;;  %v668_v46 = vand.u32 65535, %v651_v28  ;;  %v696_v17 = vand.u32 65535, %v653_v31 }
 0x438   : > { %v671_v34 = vcvt.s32.f32 %v669_v32  ;;  %v699_v37 = vcvt.s32.f32 %v697_v33  ;;  %v670_v47 = vcvt.s32.f32 %v668_v46  ;;  %v698_v49 = vcvt.s32.f32 %v696_v17 }
 0x43a   : > { %672 = vmin.xlane.f32.xlu1 %v671_v34  ;;  %700 = vmin.xlane.f32.xlu0 %v699_v37 }
 0x4a4   : > { %v687_v41 = vpop.xlane.xlu2 %686 }
 0x4a5   : > { %v659_v43 = vpop.xlane.xlu0 %658  ;;  %vm688_vm6 = vcmp.eq.f32.partialorder %v685_v24, %v687_v41  ;;  %v693_v48 = vcvt.f32.s32 %v687_v41 }
 0x4a6   : > { %vm660_vm7 = vcmp.eq.f32.partialorder %v657_v25, %v659_v43  ;;  %v689_v44 = vsel %vm688_vm6, %v684_v40, inf  ;;  %v665_v29 = vcvt.f32.s32 %v659_v43 }
 0x4a7   : > { %v661_v45 = vsel %vm660_vm7, %v656_v42, inf  ;;  %690 = vmin.xlane.f32.xlu0 %v689_v44  ;;  %v694_v54 = vshll.u32 %v693_v48, 16 }
 0x4a8   : > { %662 = vmin.xlane.f32.xlu1 %v661_v45  ;;  %v666_v57 = vshll.u32 %v665_v29, 16 }
 0x4ad   : > { %v673_v50 = vpop.xlane.xlu1 %672  ;;  %v701_v35 = vpop.xlane.xlu0 %700 }
 0x4ae   : > { %vm674_vm8 = vcmp.eq.f32.partialorder %v671_v34, %v673_v50  ;;  %vm702_vm9 = vcmp.eq.f32.partialorder %v699_v37, %v701_v35  ;;  %v679_v62 = vcvt.f32.s32 %v673_v50  ;;  %v707_v63 = vcvt.f32.s32 %v701_v35 }
 0x4af   : > { %v675_v36 = vsel %vm674_vm8, %v670_v47, inf  ;;  %v703_v52 = vsel %vm702_vm9, %v698_v49, inf }
 0x4b0   : > { %676 = vmin.xlane.f32.xlu2 %v675_v36  ;;  %704 = vmin.xlane.f32.xlu1 %v703_v52  ;;  %v680_v7 = vshll.u32 %v679_v62, 16 }
 0x51a   : > { %v691_v53 = vpop.xlane.xlu0 %690 }
 0x51b   : > { %v663_v55 = vpop.xlane.xlu1 %662  ;;  %v692_v56 = vcvt.f32.s32 %v691_v53 }
 0x51c   : > { %v664_v58 = vcvt.f32.s32 %v663_v55 }
 0x51d   : > { %v695_v59 = vadd.s32 %v694_v54, %v692_v56 }
 0x51e   : > { %v667_v60 = vadd.s32 %v666_v57, %v664_v58 }
 0x51f   : > { %v712_v61 = vsel %vm420_vm1, %v1355_v1, %v695_v59  ;;  %v708_v1 = vshll.u32 %v707_v63, 16 }
 0x520   : > { %v710_v0 = vsel %vm418_vm2, %v1360_v2, %v667_v60  ;;  %717 = vst.msk [vmem:[%s1597_s4 + $0x10] sm:$0xff] %vm714_vm10, %v712_v61 }
 0x521   : > { %715 = vst.msk [vmem:[%s1597_s4] sm:$0xff] %vm714_vm10, %v710_v0 }
 0x523   : > { %v705_v4 = vpop.xlane.xlu1 %704  ;;  %v677_v6 = vpop.xlane.xlu2 %676 }
 0x524   : > { %v706_v8 = vcvt.f32.s32 %v705_v4  ;;  %v678_v9 = vcvt.f32.s32 %v677_v6 }
 0x526   : > { %v709_v10 = vadd.s32 %v708_v1, %v706_v8  ;;  %v681_v11 = vadd.s32 %v680_v7, %v678_v9 }
 0x528   : > { %v713_v2 = vsel %vm421_vm3, %v1365_v3, %v709_v10  ;;  %v711_v12 = vsel %vm419_vm4, %v1373_v5, %v681_v11 }
 0x529   : > { %718 = vst.msk [vmem:[%s1597_s4 + $0x18] sm:$0xff] %vm714_vm10, %v713_v2 }
 0x52a   : > { %716 = vst.msk [vmem:[%s1597_s4 + $0x8] sm:$0xff] %vm714_vm10, %v711_v12 }
 0x52b PF: > { %s17_s20 = sadd.s32 1, %s1191_s20   ;;  %s1612_s15 = smov %s1175_s16 }
 0x52c   : > { %p14_p4 = scmp.ge.s32.totalorder %s17_s20, 6   ;;  %s1613_s16 = smov %s1179_s17 }
 0x52d   : > { %s1614_s17 = smov %s1307_s6  ;;  %s1615_s18 = smov %s1187_s19 }
 0x52e   : > { %s1616_s19 = smov %s1618_s24  ;;  %16 = sbr.rel (!%p14_p4) target bundleno = 5 (0x5), region = 100 }
 0x533   :  { %741 = vsyncpa [#allocation3], 1 }
 0x534   :  { %743 = vsyncpa [#allocation3 + $0x1], 1 }
 0x535   :  { %744 = vsyncpa [#allocation6], 1 }
 0x536   :  { %745 = vsyncpa [#allocation4], 1 }
 0x537   :  { %747 = vsyncpa [#allocation4 + $0x1], 1 }

</bundles_post_ra>
